<compile_context>
chip_gen: v7x
topology: tpu7x:2x2x1
jax: 0.10.0
libtpu: 0.0.40
codegen_flags: <defaults>
</compile_context>

<pallas_src>
import jax
import jax.numpy as jnp
from jax.experimental import pallas as pl
from jax.experimental.pallas import tpu as pltpu


def autoencoder_kernel(x_ref,
                       w1_ref, b1_ref,
                       w23_ref, b23_ref,
                       w4_ref, b4_ref,
                       out_ref):
    # x is already bf16 (cast outside the kernel); f32 accumulation on the MXU.
    x = x_ref[...]

    # ---- encoder layer 1: num_items -> 128, ReLU ----
    h1 = jnp.dot(x, w1_ref[...], preferred_element_type=jnp.float32) + b1_ref[...]
    h1 = jnp.maximum(h1, 0.0).astype(jnp.bfloat16)

    # ---- fused bottleneck (enc 128->64 and dec 64->128, no nonlinearity
    # in between) collapsed into a single 128x128 dot, then ReLU ----
    h2 = jnp.dot(h1, w23_ref[...], preferred_element_type=jnp.float32) + b23_ref[...]
    h2 = jnp.maximum(h2, 0.0).astype(jnp.bfloat16)

    # ---- decoder layer 2: 128 -> num_items, Sigmoid ----
    logits = jnp.dot(h2, w4_ref[...], preferred_element_type=jnp.float32) + b4_ref[...]

    # Sigmoid: exp on the EUP; approx reciprocal keeps the divide off the VALU.
    # Clamp to [0,1] so the approximation can never leave the sigmoid range.
    sig = pl.reciprocal(1.0 + jnp.exp(-logits), approx=True)
    out_ref[...] = jnp.clip(sig, 0.0, 1.0).astype(out_ref.dtype)


def autoencoder_forward(x, kparams, *, block_m=None):
    """x: (B, num_items) float32/bf16.  kparams: fused/bf16 kernel params dict.

    Returns bf16 (B, num_items) sigmoid outputs.
    """
    B, num_items = x.shape
    w1, b1 = kparams["w1"], kparams["b1"]
    w23, b23 = kparams["w23"], kparams["b23"]
    w4, b4 = kparams["w4"], kparams["b4"]

    # Tile choice: TM=128 keeps grid >= 2 at B=256 (feeds both v7x TCs); only
    # go to TM=256 (better v6e MXU row fill) when there is enough batch for it.
    if block_m is None:
        block_m = 256 if (B >= 512 and B % 256 == 0) else 128
    tm = min(block_m, B)
    grid = (pl.cdiv(B, tm),)

    # Cast the batch input to bf16 once, outside the kernel -> halves input DMA.
    x_bf16 = x.astype(jnp.bfloat16)

    # Weights/biases: same block index for every grid step -> fetched once,
    # stay resident in VMEM across the whole batch loop.
    # TODO(synk): mark these pipeline_mode=pl.Buffered(1) once w1/w4 reach MiB
    # scale (grid-invariant blocks don't need a second pipeline buffer).
    def resident(arr):
        return pl.BlockSpec(arr.shape, lambda i: (0,) * arr.ndim)

    # VMEM budget: bf16 in/out tiles (double-buffered) + bf16 weights (x2 for
    # the pipeline's second buffer) + headroom.  Explicit so large num_items
    # doesn't trip the default scoped limit (16 MiB v5e / 32 MiB v6e,v7x).
    tile_bytes = 2 * (2 * tm * num_items * 2)                       # x + out, 2 bufs each
    weight_bytes = 2 * 2 * (num_items * 128 + 128 * 128 + 128 * num_items)
    vmem_bytes = int(min(max(2 * (tile_bytes + weight_bytes), 32 << 20), 64 << 20))

    # Scheduler hint so XLA overlaps this ~µs kernel with surrounding ops.
    flops = 2 * B * (num_items * 128 + 128 * 128 + 128 * num_items)
    bytes_accessed = (B * num_items * 2 * 2          # bf16 x + bf16 out
                      + weight_bytes // 2            # one copy of the weights
                      + 4 * (128 + 128 + num_items)) # f32 biases
    cost = pl.CostEstimate(flops=flops,
                           transcendentals=B * num_items,      # exp in sigmoid
                           bytes_accessed=bytes_accessed)

    # TODO(synk): for very large num_items (>~13K on v7x's 32 MiB scoped /
    # 64 MiB physical VMEM), tile w1 along K with a reduction grid axis
    # (pl.when-init'd accumulator) and tile w4/out along N instead of keeping
    # them fully resident; not needed at these sizes.
    return pl.pallas_call(
        autoencoder_kernel,
        out_shape=jax.ShapeDtypeStruct((B, num_items), jnp.bfloat16),
        grid_spec=pltpu.PrefetchScalarGridSpec(
            num_scalar_prefetch=0,
            grid=grid,
            in_specs=[
                pl.BlockSpec((tm, num_items), lambda i: (i, 0)),
                resident(w1), resident(b1),
                resident(w23), resident(b23),
                resident(w4), resident(b4),
            ],
            out_specs=pl.BlockSpec((tm, num_items), lambda i: (i, 0)),
        ),
        compiler_params=pltpu.CompilerParams(
            dimension_semantics=("parallel",),   # megacore sharding on v7x, no-op on v5e/v6e
            vmem_limit_bytes=vmem_bytes,
        ),
        cost_estimate=cost,
    )(x_bf16, w1, b1, w23, b23, w4, b4)


def init_params(key, num_items):
    """Deterministic f32 init mimicking PyTorch's U(-1/sqrt(fan_in), 1/sqrt(fan_in)).
    Weights stored already transposed to (in, out); biases as (1, out)."""
    def linear(key, fan_in, fan_out):
        kw, kb = jax.random.split(key)
        bound = 1.0 / jnp.sqrt(fan_in)
        w = jax.random.uniform(kw, (fan_in, fan_out), jnp.float32, -bound, bound)
        b = jax.random.uniform(kb, (1, fan_out), jnp.float32, -bound, bound)
        return w, b

    k1, k2, k3, k4 = jax.random.split(key, 4)
    w1, b1 = linear(k1, num_items, 128)
    w2, b2 = linear(k2, 128, 64)
    w3, b3 = linear(k3, 64, 128)
    w4, b4 = linear(k4, 128, num_items)
    return {"w1": w1, "b1": b1, "w2": w2, "b2": b2,
            "w3": w3, "b3": b3, "w4": w4, "b4": b4}


def prepare_kernel_params(p):
    """Fuse the linear 128->64->128 bottleneck (no nonlinearity between the two
    layers) in f32, then cast weights to bf16 for the MXU.  Biases stay f32."""
    w23 = p["w2"] @ p["w3"]                 # (128, 128), exact in f32
    b23 = p["b2"] @ p["w3"] + p["b3"]       # (1, 128)
    return {
        "w1": p["w1"].astype(jnp.bfloat16), "b1": p["b1"],
        "w23": w23.astype(jnp.bfloat16),    "b23": b23,
        "w4": p["w4"].astype(jnp.bfloat16), "b4": p["b4"],
    }


def reference_forward(x, p):
    """Pure-JAX f32 reference of the original (unfused) module."""
    h1 = jnp.maximum(x @ p["w1"] + p["b1"], 0.0)
    enc = h1 @ p["w2"] + p["b2"]
    h2 = jnp.maximum(enc @ p["w3"] + p["b3"], 0.0)
    return jax.nn.sigmoid(h2 @ p["w4"] + p["b4"])


if __name__ == "__main__":
    num_items = 256
    batch = 256          # tm=128 -> grid=2: full MXU rows and both v7x TCs busy

    key = jax.random.PRNGKey(0)
    kx, kp = jax.random.split(key)
    x = jax.random.uniform(kx, (batch, num_items), jnp.float32)  # implicit-feedback style input
    params = init_params(kp, num_items)
    kparams = prepare_kernel_params(params)

    out = autoencoder_forward(x, kparams)
    out = jax.block_until_ready(out)

    # Compare against the f32 reference evaluated on the same bf16-rounded input
    # (isolates kernel-internal error from input quantization).
    x_q = x.astype(jnp.bfloat16).astype(jnp.float32)
    ref = reference_forward(x_q, params)

    assert out.shape == (batch, num_items)
    assert out.dtype == jnp.bfloat16
    err = float(jnp.max(jnp.abs(out.astype(jnp.float32) - ref)))
    # bf16 MXU operands / bf16 output + approx reciprocal -> relaxed tolerance
    assert jnp.allclose(out.astype(jnp.float32), ref, atol=2e-2, rtol=2e-2), err

    print("KERNEL_OK")
</pallas_src>

<mosaic_0001>
module attributes {stable_mosaic.version = 11 : i64} {
  func.func @autoencoder_kernel(%arg0: i32, %arg1: memref<128x256xbf16, #tpu.memory_space<vmem>>, %arg2: memref<256x128xbf16, #tpu.memory_space<vmem>>, %arg3: memref<1x128xf32, #tpu.memory_space<vmem>>, %arg4: memref<128x128xbf16, #tpu.memory_space<vmem>>, %arg5: memref<1x128xf32, #tpu.memory_space<vmem>>, %arg6: memref<128x256xbf16, #tpu.memory_space<vmem>>, %arg7: memref<1x256xf32, #tpu.memory_space<vmem>>, %arg8: memref<128x256xbf16, #tpu.memory_space<vmem>>) attributes {dimension_semantics = [#tpu.dimension_semantics<parallel>], iteration_bounds = array<i64: 2>, scalar_prefetch = 0 : i64, scratch_operands = 0 : i64, tpu.core_type = #tpu.core_type<tc>, window_params = [{transform_indices = @transform_0, window_bounds = array<i64: 128, 256>}, {pipeline_mode = #tpu.pipeline_mode<synchronous>, transform_indices = @transform_1, window_bounds = array<i64: 256, 128>}, {pipeline_mode = #tpu.pipeline_mode<synchronous>, transform_indices = @transform_2, window_bounds = array<i64: 1, 128>}, {pipeline_mode = #tpu.pipeline_mode<synchronous>, transform_indices = @transform_3, window_bounds = array<i64: 128, 128>}, {pipeline_mode = #tpu.pipeline_mode<synchronous>, transform_indices = @transform_4, window_bounds = array<i64: 1, 128>}, {pipeline_mode = #tpu.pipeline_mode<synchronous>, transform_indices = @transform_5, window_bounds = array<i64: 128, 256>}, {pipeline_mode = #tpu.pipeline_mode<synchronous>, transform_indices = @transform_6, window_bounds = array<i64: 1, 256>}, {transform_indices = @transform_7, window_bounds = array<i64: 128, 256>}]} {
    %c0 = arith.constant 0 : index
    %c0_0 = arith.constant 0 : index
    %0 = vector.load %arg1[%c0, %c0_0] : memref<128x256xbf16, #tpu.memory_space<vmem>>, vector<128x256xbf16>
    %c0_1 = arith.constant 0 : index
    %c0_2 = arith.constant 0 : index
    %1 = vector.load %arg2[%c0_1, %c0_2] : memref<256x128xbf16, #tpu.memory_space<vmem>>, vector<256x128xbf16>
    %cst = arith.constant dense<0.000000e+00> : vector<128x128xf32>
    %2 = tpu.matmul %0, %1, %cst {dimension_numbers = #tpu.dot_dimension_numbers<[1], [0], [0], [1], [0, 0, 1, 1], [], []>} : vector<128x256xbf16>, vector<256x128xbf16>, vector<128x128xf32> -> vector<128x128xf32>
    %c0_3 = arith.constant 0 : index
    %c0_4 = arith.constant 0 : index
    %3 = vector.load %arg3[%c0_3, %c0_4] : memref<1x128xf32, #tpu.memory_space<vmem>>, vector<1x128xf32>
    %4 = vector.broadcast %3 : vector<1x128xf32> to vector<128x128xf32>
    %5 = arith.addf %2, %4 : vector<128x128xf32>
    %cst_5 = arith.constant 0.000000e+00 : f32
    %6 = vector.broadcast %cst_5 : f32 to vector<128x128xf32>
    %7 = arith.maximumf %5, %6 : vector<128x128xf32>
    %8 = arith.truncf %7 : vector<128x128xf32> to vector<128x128xbf16>
    %c0_6 = arith.constant 0 : index
    %c0_7 = arith.constant 0 : index
    %9 = vector.load %arg4[%c0_6, %c0_7] : memref<128x128xbf16, #tpu.memory_space<vmem>>, vector<128x128xbf16>
    %cst_8 = arith.constant dense<0.000000e+00> : vector<128x128xf32>
    %10 = tpu.matmul %8, %9, %cst_8 {dimension_numbers = #tpu.dot_dimension_numbers<[1], [0], [0], [1], [0, 0, 1, 1], [], []>} : vector<128x128xbf16>, vector<128x128xbf16>, vector<128x128xf32> -> vector<128x128xf32>
    %c0_9 = arith.constant 0 : index
    %c0_10 = arith.constant 0 : index
    %11 = vector.load %arg5[%c0_9, %c0_10] : memref<1x128xf32, #tpu.memory_space<vmem>>, vector<1x128xf32>
    %12 = vector.broadcast %11 : vector<1x128xf32> to vector<128x128xf32>
    %13 = arith.addf %10, %12 : vector<128x128xf32>
    %cst_11 = arith.constant 0.000000e+00 : f32
    %14 = vector.broadcast %cst_11 : f32 to vector<128x128xf32>
    %15 = arith.maximumf %13, %14 : vector<128x128xf32>
    %16 = arith.truncf %15 : vector<128x128xf32> to vector<128x128xbf16>
    %c0_12 = arith.constant 0 : index
    %c0_13 = arith.constant 0 : index
    %17 = vector.load %arg6[%c0_12, %c0_13] : memref<128x256xbf16, #tpu.memory_space<vmem>>, vector<128x256xbf16>
    %cst_14 = arith.constant dense<0.000000e+00> : vector<128x256xf32>
    %18 = tpu.matmul %16, %17, %cst_14 {dimension_numbers = #tpu.dot_dimension_numbers<[1], [0], [0], [1], [0, 0, 1, 1], [], []>} : vector<128x128xbf16>, vector<128x256xbf16>, vector<128x256xf32> -> vector<128x256xf32>
    %c0_15 = arith.constant 0 : index
    %c0_16 = arith.constant 0 : index
    %19 = vector.load %arg7[%c0_15, %c0_16] : memref<1x256xf32, #tpu.memory_space<vmem>>, vector<1x256xf32>
    %20 = vector.broadcast %19 : vector<1x256xf32> to vector<128x256xf32>
    %21 = arith.addf %18, %20 : vector<128x256xf32>
    %cst_17 = arith.constant 0.000000e+00 : f32
    %22 = vector.broadcast %cst_17 : f32 to vector<128x256xf32>
    %23 = arith.subf %22, %21 : vector<128x256xf32>
    %24 = math.exp %23 : vector<128x256xf32>
    %cst_18 = arith.constant 1.000000e+00 : f32
    %25 = vector.broadcast %cst_18 : f32 to vector<128x256xf32>
    %26 = arith.addf %25, %24 : vector<128x256xf32>
    %27 = tpu.reciprocal %26 {approx = true} : vector<128x256xf32> -> vector<128x256xf32>
    %cst_19 = arith.constant 0.000000e+00 : f32
    %cst_20 = arith.constant 1.000000e+00 : f32
    %28 = vector.broadcast %cst_19 : f32 to vector<128x256xf32>
    %29 = arith.maximumf %28, %27 : vector<128x256xf32>
    %30 = vector.broadcast %cst_20 : f32 to vector<128x256xf32>
    %31 = arith.minimumf %30, %29 : vector<128x256xf32>
    %32 = arith.truncf %31 : vector<128x256xf32> to vector<128x256xbf16>
    %c0_21 = arith.constant 0 : index
    %c0_22 = arith.constant 0 : index
    %33 = vector.load %arg8[%c0_21, %c0_22] : memref<128x256xbf16, #tpu.memory_space<vmem>>, vector<128x256xbf16>
    tpu.vector_store %arg8[%c0_21, %c0_22], %32 {strides = array<i32>} : memref<128x256xbf16, #tpu.memory_space<vmem>>, vector<128x256xbf16>,
    return
  }
  func.func @transform_0(%arg0: i32) -> (i32, i32) {
    %c0_i32 = arith.constant 0 : i32
    %c0_i32_0 = arith.constant 0 : i32
    return %arg0, %c0_i32 : i32, i32
  }
  func.func @transform_1(%arg0: i32) -> (i32, i32) {
    %c0_i32 = arith.constant 0 : i32
    %c0_i32_0 = arith.constant 0 : i32
    %c0_i32_1 = arith.constant 0 : i32
    return %c0_i32, %c0_i32_0 : i32, i32
  }
  func.func @transform_2(%arg0: i32) -> (i32, i32) {
    %c0_i32 = arith.constant 0 : i32
    %c0_i32_0 = arith.constant 0 : i32
    %c0_i32_1 = arith.constant 0 : i32
    return %c0_i32, %c0_i32_0 : i32, i32
  }
  func.func @transform_3(%arg0: i32) -> (i32, i32) {
    %c0_i32 = arith.constant 0 : i32
    %c0_i32_0 = arith.constant 0 : i32
    %c0_i32_1 = arith.constant 0 : i32
    return %c0_i32, %c0_i32_0 : i32, i32
  }
  func.func @transform_4(%arg0: i32) -> (i32, i32) {
    %c0_i32 = arith.constant 0 : i32
    %c0_i32_0 = arith.constant 0 : i32
    %c0_i32_1 = arith.constant 0 : i32
    return %c0_i32, %c0_i32_0 : i32, i32
  }
  func.func @transform_5(%arg0: i32) -> (i32, i32) {
    %c0_i32 = arith.constant 0 : i32
    %c0_i32_0 = arith.constant 0 : i32
    %c0_i32_1 = arith.constant 0 : i32
    return %c0_i32, %c0_i32_0 : i32, i32
  }
  func.func @transform_6(%arg0: i32) -> (i32, i32) {
    %c0_i32 = arith.constant 0 : i32
    %c0_i32_0 = arith.constant 0 : i32
    %c0_i32_1 = arith.constant 0 : i32
    return %c0_i32, %c0_i32_0 : i32, i32
  }
  func.func @transform_7(%arg0: i32) -> (i32, i32) {
    %c0_i32 = arith.constant 0 : i32
    %c0_i32_0 = arith.constant 0 : i32
    return %arg0, %c0_i32 : i32, i32
  }
}

</mosaic_0001>

<bundles_post_ra>
// kernel: tpu_custom_call.1
= control target key start
LH: loop header
LB: loop body
LE: loop exit
PB: predicated region body
PF: predicated region fallthrough
CT: control target
= control target key end

     0   :  { %12 = vsyncpa [#allocation3], 0  ;;  %s2734_s0 = inlined_call_operand.hbm [shape: bf16[256,256], index: 0, kind: input, shape index: {}]   ;;  %s2735_s1 = inlined_call_operand.hbm [shape: bf16[256,128], index: 1, kind: input, shape index: {}]   ;;  %s2736_s2 = inlined_call_operand.vmem [shape: f32[1,128], index: 2, kind: input, shape index: {}]   ;;  %s2737_s3 = inlined_call_operand.hbm [shape: bf16[128,128], index: 3, kind: input, shape index: {}]   ;;  %s2738_s4 = inlined_call_operand.vmem [shape: f32[1,128], index: 4, kind: input, shape index: {}]   ;;  %s2739_s5 = inlined_call_operand.hbm [shape: bf16[128,256], index: 5, kind: input, shape index: {}]   ;;  %s2740_s6 = inlined_call_operand.vmem [shape: f32[1,256], index: 6, kind: input, shape index: {}]   ;;  %s2741_s7 = inlined_call_operand.hbm [shape: bf16[256,256], index: 7, kind: output, shape index: {}]  }
   0x1   :  { %14 = vsyncpa [#allocation3 + $0x1], 0 }
   0x2   :  { %15 = vsyncpa [#allocation6], 0 }
   0x3   :  { %16 = vsyncpa [#allocation9], 0 }
   0x4   :  { %17 = vsyncpa [#allocation4], 0 }
   0x5   :  { %19 = vsyncpa [#allocation4 + $0x1], 0  ;;  %s2333_s24 = smov 0   ;;  %s2335_s25 = smov 0  }
   0x6   :  { %s2337_s26 = smov 0   ;;  %s2339_s27 = smov 0  }
   0x7 LB: > { %s2354_s28 = sadd.s32 4294967295, %s2279_s27   ;;  %s1563_s29 = sadd.s32 4294967294, %s2279_s27   ;;  %s2279_s27 = sphi %s2339_s27, %s2767_s27   ;;  %s2275_s26 = sphi %s2337_s26, %s2766_s26   ;;  %s2271_s25 = sphi %s2335_s25, %s2765_s25   ;;  %s2267_s24 = sphi %s2333_s24, %s2764_s24  }
   0x8   : > { %p45_p0 = scmp.ne.s32.totalorder %s2271_s25, %s2267_s24  ;;  %p2742_p1 = scmp.eq.s32.totalorder %s2354_s28, 0 }
   0x9   : > { %p201_p3 = scmp.eq.s32.totalorder %s1563_s29, 1  ;;  %p1564_p5 = scmp.ge.s32.totalorder %s2279_s27, 1 }
   0xa   : > { %p2363_p4 = por %p2742_p1, %p45_p0  ;;  %p208_p7 = scmp.lt.s32.totalorder %s2279_s27, 3 }
   0xb   : > { %p2368_p6 = por %p201_p3, %p45_p0  ;;  %s2281_s10 = smov [#allocation5]  }
   0xc   : > { %s2746_s30 = scalar_select %p2363_p4, 1, 0 }
   0xd   : > { %s2747_s8 = scalar_select %p2368_p6, 1, 0 }
   0xe   : > { %p2373_p8 = pnand %p1564_p5, %p208_p7  ;;  %s220_s11 = sshll.u32 %s2281_s10, 4  ;;  %s2377_s11 = int_to_ptr.vmem [resolvable:$true] %s220_s11 }
   0xf   : > { %2748 = sst [smem:[#allocation15_spill]] %s2747_s8  ;;  %s2282_s13 = smov [#allocation7]  }
  0x10   : > { %s2749_s9 = scalar_select %p2373_p8, 1, 0 }
  0x11   : > { %p1823_p9 = pneg %p2373_p8  ;;  %s236_s14 = sshll.u32 %s2282_s13, 4  ;;  %s2388_s14 = int_to_ptr.vmem [resolvable:$true] %s236_s14 }
  0x12   : > { %s2283_s15 = smov [#allocation8]   ;;  %s2091_s19 = scalar_lea.hbm %s2735_s1, 2048 }
  0x13   : > { %p2384_p11 = pnand %p1823_p9, %p2742_p1  ;;  %s2390_s16 = sshll.u32 %s2283_s15, 4  ;;  %s253_s16 = int_to_ptr.vmem [resolvable:$true] %s2390_s16 }
  0x14   : > { %p2092_p12 = scmp.ne.s32.totalorder %s2735_s1, %s2091_s19  ;;  %p2098_p5 = scmp.lt.u32.totalorder %s2091_s19, %s2735_s1 }
  0x15   : > { %p2400_p13 = pneg %p2384_p11 }
  0x17   : > { %p2094_p0 = pnand %p2400_p13, %p2092_p12 }
  0x19   : > { %p2095_p3 = pneg %p2094_p0 }
  0x1b   : > { %p2100_p7 = pnand %p2098_p5, %p2095_p3 }
  0x1d   : > { %2103 = shalt.err (!%p2100_p7)
}
  0x1e   : > { %s2104_s10 = scalar_lea.vmem %s2377_s11, 2048  ;;  %p2112_p2 = scmp.lt.s32.totalorder %s2377_s11, %s2377_s11 }
  0x1f   : > { %p2105_p9 = scmp.ne.s32.totalorder %s2377_s11, %s2104_s10  ;;  %p2113_p6 = scmp.lt.s32.totalorder %s2104_s10, %s2104_s10 }
  0x21   : > { %p2107_p10 = pnand %p2105_p9, %p2400_p13  ;;  %p2114_p12 = por %p2113_p6, %p2112_p2 }
  0x23   : > { %p2108_p1 = pneg %p2107_p10 }
  0x25   : > { %p2115_p0 = pnand %p2114_p12, %p2108_p1 }
  0x27   : > { %2118 = shalt.err (!%p2115_p0)
}
  0x28   : > { %s2284_s13 = smov 64   ;;  %s2285_s15 = smov 4  }
  0x29   : > { %1826 = dma.hbm_to_vmem [thread:$0]  (!%p2384_p11), %s2735_s1, 2048, %s2377_s11, [#allocation6], %s2284_s13, %s2284_s13, %s2285_s15  }
  0x2a   : > { %s2119_s21 = scalar_lea.hbm %s2737_s3, 1024 }
  0x2b   : > { %p2120_p2 = scmp.ne.s32.totalorder %s2737_s3, %s2119_s21  ;;  %p2126_p10 = scmp.lt.u32.totalorder %s2119_s21, %s2737_s3 }
  0x2d   : > { %p2122_p1 = pnand %p2120_p2, %p2400_p13 }
  0x2f   : > { %p2123_p6 = pneg %p2122_p1 }
  0x31   : > { %p2128_p3 = pnand %p2126_p10, %p2123_p6 }
  0x33   : > { %2131 = shalt.err (!%p2128_p3)
}
  0x34   : > { %s2132_s11 = scalar_lea.vmem %s2388_s14, 1024  ;;  %p2140_p12 = scmp.lt.s32.totalorder %s2388_s14, %s2388_s14 }
  0x35   : > { %p2133_p5 = scmp.ne.s32.totalorder %s2388_s14, %s2132_s11  ;;  %p2141_p0 = scmp.lt.s32.totalorder %s2132_s11, %s2132_s11 }
  0x37   : > { %p2135_p7 = pnand %p2133_p5, %p2400_p13  ;;  %p2142_p2 = por %p2141_p0, %p2140_p12 }
  0x39   : > { %p2136_p9 = pneg %p2135_p7 }
  0x3b   : > { %p2143_p1 = pnand %p2142_p2, %p2136_p9 }
  0x3d   : > { %2146 = shalt.err (!%p2143_p1)
}
  0x3e   : > { %1829 = dma.hbm_to_vmem [thread:$0]  (!%p2384_p11), %s2737_s3, 1024, %s2388_s14, [#allocation6], %s2284_s13, %s2284_s13, %s2285_s15  }
  0x3f   : > { %s2147_s20 = scalar_lea.hbm %s2739_s5, 2048 }
  0x40   : > { %p2148_p6 = scmp.ne.s32.totalorder %s2739_s5, %s2147_s20  ;;  %p2154_p5 = scmp.lt.u32.totalorder %s2147_s20, %s2739_s5 }
  0x42   : > { %p2150_p10 = pnand %p2148_p6, %p2400_p13 }
  0x44   : > { %p2151_p3 = pneg %p2150_p10 }
  0x46   : > { %p2156_p7 = pnand %p2154_p5, %p2151_p3 }
  0x48   : > { %2159 = shalt.err (!%p2156_p7)
}
  0x49   : > { %s2160_s11 = scalar_lea.vmem %s253_s16, 2048  ;;  %p2168_p2 = scmp.lt.s32.totalorder %s253_s16, %s253_s16 }
  0x4a   : > { %p2161_p9 = scmp.ne.s32.totalorder %s253_s16, %s2160_s11  ;;  %p2169_p1 = scmp.lt.s32.totalorder %s2160_s11, %s2160_s11 }
  0x4c   : > { %p2163_p12 = pnand %p2161_p9, %p2400_p13  ;;  %p2170_p4 = por %p2169_p1, %p2168_p2 }
  0x4e   : > { %p2164_p0 = pneg %p2163_p12 }
  0x50   : > { %p2171_p8 = pnand %p2170_p4, %p2164_p0 }
  0x52   : > { %2174 = shalt.err (!%p2171_p8)
}
  0x53   : > { %s2286_s14 = smov 128   ;;  %s2287_s22 = smov 8  }
  0x54   : > { %1832 = dma.hbm_to_vmem [thread:$0]  (!%p2384_p11), %s2739_s5, 2048, %s253_s16, [#allocation9], %s2286_s14, %s2286_s14, %s2287_s22  }
  0x55   : > { %s2467_s8 = sadd.s32 1, %s2279_s27   ;;  %s32_s18 = sadd.s32 1, %s2275_s26 }
  0x56   : > { %s29_s17 = ssub.s32 %s2279_s27, %s2467_s8  ;;  %p39_p8 = scmp.ne.s32.totalorder %s2275_s26, %s2271_s25 }
  0x57   : > { %p30_p4 = scmp.eq.s32.totalorder %s29_s17, 0  ;;  %p40_p13 = scmp.eq.s32.totalorder %s2279_s27, 0 }
  0x58   : > { %p1844_p6 = scmp.lt.s32.totalorder %s2279_s27, 2  ;;  %p2752_p3 = scmp.eq.s32.totalorder %s2354_s28, 1 }
  0x59   : > { %s2477_s19 = scalar_select %p30_p4, %s2275_s26, %s32_s18  }
  0x5a   : > { %p41_p10 = por %p40_p13, %p39_p8  ;;  %p2481_p5 = por %p2752_p3, %p39_p8 }
  0x5b   : > { %s269_s20 = sand.u32 1, %s2275_s26   ;;  %s1660_s21 = sshll.u32 %s2279_s27, 11 }
  0x5c   : > { %s1569_s16 = sshll.u32 %s269_s20, 7  ;;  %s2490_s10 = scalar_lea.hbm %s2734_s0, %s1660_s21 }
  0x5d   : > { %s273_s11 = scalar_lea.vmem [#allocation2], %s1569_s16  ;;  %p2492_p11 = pnand %p1844_p6, %p41_p10 }
  0x5e   : > { %s281_s13 = sshll.u32 %s273_s11, 4  ;;  %s2498_s17 = scalar_lea.sflag [#allocation3], %s269_s20  ;;  %s2496_s13 = int_to_ptr.vmem [resolvable:$true] %s281_s13 }
  0x5f   : > { %s2175_s18 = scalar_lea.hbm %s2490_s10, 2048  ;;  %p2177_p9 = pneg %p2492_p11 }
  0x60   : > { %p2176_p7 = scmp.ne.s32.totalorder %s2490_s10, %s2175_s18  ;;  %s2180_s23 = scalar_lea.hbm %s2734_s0, 4096 }
  0x61   : > { %p2181_p2 = scmp.lt.u32.totalorder %s2490_s10, %s2734_s0  ;;  %p2182_p1 = scmp.lt.u32.totalorder %s2180_s23, %s2175_s18 }
  0x62   : > { %p2178_p12 = pnand %p2177_p9, %p2176_p7  ;;  %p2184_p8 = scmp.lt.u32.totalorder %s2175_s18, %s2490_s10 }
  0x63   : > { %p2183_p4 = por %p2182_p1, %p2181_p2 }
  0x64   : > { %p2179_p0 = pneg %p2178_p12 }
  0x65   : > { %p2185_p13 = por %p2184_p8, %p2183_p4 }
  0x67   : > { %p2186_p6 = pnand %p2185_p13, %p2179_p0 }
  0x69   : > { %2189 = shalt.err (!%p2186_p6)
}
  0x6a   : > { %s2190_s20 = scalar_lea.vmem %s2496_s13, 2048  ;;  %s2288_s21 = smov [#allocation2]  }
  0x6b   : > { %p2191_p10 = scmp.ne.s32.totalorder %s2496_s13, %s2190_s20  ;;  %s2195_s16 = sshll.u32 %s2288_s21, 4  ;;  %s2196_s16 = int_to_ptr.vmem [resolvable:$false] %s2195_s16 }
  0x6c   : > { %s2197_s29 = scalar_lea.vmem %s2196_s16, 4096  ;;  %p2198_p12 = scmp.lt.s32.totalorder %s2496_s13, %s2196_s16 }
  0x6d   : > { %p2193_p3 = pnand %p2191_p10, %p2177_p9  ;;  %p2199_p2 = scmp.lt.s32.totalorder %s2197_s29, %s2190_s20 }
  0x6f   : > { %p2194_p7 = pneg %p2193_p3  ;;  %p2200_p1 = por %p2199_p2, %p2198_p12 }
  0x71   : > { %p2201_p4 = pnand %p2200_p1, %p2194_p7 }
  0x73   : > { %2204 = shalt.err (!%p2201_p4)
}
  0x74   : > { %1836 = dma.hbm_to_vmem [thread:$0]  (!%p2492_p11), %s2490_s10, 2048, %s2496_s13, %s2498_s17, %s2286_s14, %s2286_s14, %s2287_s22  }
  0x75   : > { %p2755_p9 = scmp.ne.s32.totalorder %s2749_s9, 0 }
  0x76   : > { %s2532_s18 = sand.u32 (!%p2755_p9), 1, %s2271_s25   ;;  %p2756_p0 = scmp.ne.s32.totalorder (!%p2755_p9), %s2746_s30, 0 }
  0x77   : > { %293 = sbr.rel (%p2755_p9) target bundleno = 947 (0x3b3), region = 48  ;;  %s1574_s23 = sshll.u32 (!%p2755_p9), %s2532_s18, 7 }
  0x78   : > { %s296_s11 = scalar_lea.sflag (!%p2755_p9), [#allocation3], %s2532_s18  ;;  %s2538_s15 = scalar_lea.vmem (!%p2755_p9), [#allocation2], %s1574_s23 }
  0x7e   : > { %2250 = dma.done.wait (%p2756_p0), %s296_s11, 2048  }
  0x7f   : > { %2252 = vsyncadd (%p2756_p0), %s296_s11, 4294965248  ;;  %p2757_p11 = scmp.eq.s32.totalorder %s2354_s28, 0 }
  0x81   : > { %2254 = dma.done.wait (%p2757_p11), [#allocation6], 3072   ;;  %p2758_p8 = pmov %p2757_p11 }
  0x83   : > { %2256 = vsyncadd (%p2758_p8), [#allocation6], 4294964224  ;;  %p2759_p13 = pmov %p2758_p8 }
  0x84   : > { %p2760_p6 = pmov %p2758_p8 }
  0x85   : > { %2258 = dma.done.wait (%p2759_p13), [#allocation9], 2048  }
  0x86   : > { %2260 = vsyncadd (%p2760_p6), [#allocation9], 4294965248  ;;  %v1891_v0 = vld [vmem:[#allocation5 + $0x40] sm:$0xff]   ;;  %v1893_v2 = vld [vmem:[#allocation5 + $0x48] sm:$0xff]   ;;  %s2652_s17 = scalar_lea.vmem [#allocation10], %s1574_s23  ;;  %s1678_s20 = sshll.u32 %s2354_s28, 11 }
  0x87   : > { %v1892_v1 = vld [vmem:[#allocation5] sm:$0xff]   ;;  %1679 = vmatprep.subr.bf16.mxu0 %v1891_v0  ;;  %v1894_v3 = vld [vmem:[#allocation5 + $0x8] sm:$0xff]   ;;  %v1895_v4 = vld [vmem:[#allocation5 + $0x50] sm:$0xff]   ;;  %s1461_s21 = sshll.u32 %s2652_s17, 4  ;;  %s2687_s23 = scalar_lea.hbm %s2741_s7, %s1678_s20  ;;  %s2689_s21 = int_to_ptr.vmem [resolvable:$true] %s1461_s21 }
  0x88   : > { %1680 = vmatpush3.bf16.msra.mxu0 %v1892_v1  ;;  %v1896_v5 = vld [vmem:[#allocation5 + $0x10] sm:$0xff]   ;;  %v1897_v6 = vld [vmem:[#allocation5 + $0x58] sm:$0xff]   ;;  %v1899_v8 = vld [vmem:[#allocation5 + $0x60] sm:$0xff]   ;;  %s1447_s11 = scalar_lea.sflag [#allocation4], %s2532_s18  ;;  %s2290_s28 = smov [#allocation10]  }
  0x89   : > { %1681 = vmatprep.subr.bf16.mxu0 %v1893_v2  ;;  %v1898_v7 = vld [vmem:[#allocation5 + $0x18] sm:$0xff]   ;;  %v1900_v9 = vld [vmem:[#allocation5 + $0x20] sm:$0xff]   ;;  %v1901_v10 = vld [vmem:[#allocation5 + $0x68] sm:$0xff]   ;;  %s2209_s30 = sshll.u32 %s2290_s28, 4  ;;  %s2210_s30 = int_to_ptr.vmem [resolvable:$false] %s2209_s30 }
  0x8a   : > { %v1909_v11 = vld [vmem:[%s2538_s15 + $0x4] ss:$8 sps:$4 sm:$0xff]   ;;  %v1903_v13 = vld [vmem:[#allocation5 + $0x70] sm:$0xff]   ;;  %v1905_v15 = vld [vmem:[#allocation5 + $0x78] sm:$0xff]   ;;  %s2211_s9 = scalar_lea.vmem %s2210_s30, 4096  ;;  %p2212_p12 = scmp.lt.s32.totalorder %s2689_s21, %s2210_s30 }
  0x8b   : > { %v1902_v12 = vld [vmem:[#allocation5 + $0x28] sm:$0xff]   ;;  %608 = vmatprep.mubr.bf16.mxu0 %v1909_v11  ;;  %v1904_v14 = vld [vmem:[#allocation5 + $0x30] sm:$0xff]   ;;  %v1906_v16 = vld [vmem:[#allocation5 + $0x38] sm:$0xff]  }
  0x8c   : > { %1682 = vmatpush3.bf16.msra.mxu0 %v1894_v3  ;;  %v1931_v17 = vld [vmem:[#allocation7] sm:$0xff]   ;;  %v1932_v19 = vld [vmem:[#allocation7 + $0x8] sm:$0xff]   ;;  %v1910_v20 = vld [vmem:[%s2538_s15 + $0x14] ss:$8 sps:$4 sm:$0xff]  }
  0x8d   : > { %1683 = vmatprep.subr.bf16.mxu0 %v1895_v4  ;;  %v1907_v18 = vld [vmem:[%s2538_s15] ss:$8 sps:$4 sm:$0xff]   ;;  %1759 = vmatprep.subr.bf16.mxu1 %v1931_v17  ;;  %v1933_v21 = vld [vmem:[#allocation7 + $0x10] sm:$0xff]   ;;  %v1913_v23 = vld [vmem:[%s2538_s15 + $0x24] ss:$8 sps:$4 sm:$0xff]  }
  0x8e   : > { %1760 = vmatpush3.bf16.msra.mxu1 %v1931_v17  ;;  %v1912_v22 = vld [vmem:[%s2538_s15 + $0x10] ss:$8 sps:$4 sm:$0xff]   ;;  %v1915_v24 = vld [vmem:[%s2538_s15 + $0x20] ss:$8 sps:$4 sm:$0xff]   ;;  %v1916_v25 = vld [vmem:[%s2538_s15 + $0x34] ss:$8 sps:$4 sm:$0xff]  }
  0x8f   : > { %1761 = vmatprep.subr.bf16.mxu1 %v1932_v19  ;;  %v1918_v26 = vld [vmem:[%s2538_s15 + $0x30] ss:$8 sps:$4 sm:$0xff]   ;;  %v1919_v27 = vld [vmem:[%s2538_s15 + $0x44] ss:$8 sps:$4 sm:$0xff]   ;;  %v1921_v28 = vld [vmem:[%s2538_s15 + $0x40] ss:$8 sps:$4 sm:$0xff]  }
  0x90   : > { %1684 = vmatpush3.bf16.msra.mxu0 %v1896_v5  ;;  %v1922_v29 = vld [vmem:[%s2538_s15 + $0x54] ss:$8 sps:$4 sm:$0xff]   ;;  %v1924_v30 = vld [vmem:[%s2538_s15 + $0x50] ss:$8 sps:$4 sm:$0xff]   ;;  %v1925_v31 = vld [vmem:[%s2538_s15 + $0x64] ss:$8 sps:$4 sm:$0xff]  }
  0x91   : > { %1685 = vmatprep.subr.bf16.mxu0 %v1897_v6  ;;  %v1927_v32 = vld [vmem:[%s2538_s15 + $0x60] ss:$8 sps:$4 sm:$0xff]   ;;  %v1928_v33 = vld [vmem:[%s2538_s15 + $0x74] ss:$8 sps:$4 sm:$0xff]   ;;  %v1930_v34 = vld [vmem:[%s2538_s15 + $0x70] ss:$8 sps:$4 sm:$0xff]  }
  0x92   : > { %1762 = vmatpush3.bf16.msra.mxu1 %v1932_v19  ;;  %v1934_v35 = vld [vmem:[#allocation7 + $0x18] sm:$0xff]   ;;  %v1935_v36 = vld [vmem:[#allocation7 + $0x20] sm:$0xff]   ;;  %v1936_v37 = vld [vmem:[#allocation7 + $0x28] sm:$0xff]   ;;  %s2205_s15 = scalar_lea.vmem %s2689_s21, 2048 }
  0x93   : > { %1763 = vmatprep.subr.bf16.mxu1 %v1933_v21  ;;  %v1937_v38 = vld [vmem:[#allocation7 + $0x30] sm:$0xff]   ;;  %v1938_v39 = vld [vmem:[#allocation7 + $0x38] sm:$0xff]   ;;  %v1939_v40 = vld [vmem:[#allocation8] ss:$8 sps:$4 sm:$0xff]   ;;  %p2206_p10 = scmp.ne.s32.totalorder %s2689_s21, %s2205_s15  ;;  %p2213_p2 = scmp.lt.s32.totalorder %s2211_s9, %s2205_s15 }
  0x94   : > { %1686 = vmatpush3.bf16.msra.mxu0 %v1898_v7  ;;  %v1941_v41 = vld [vmem:[#allocation8 + $0x4] ss:$8 sps:$4 sm:$0xff]   ;;  %v1944_v42 = vld [vmem:[#allocation8 + $0x14] ss:$8 sps:$4 sm:$0xff]   ;;  %v1942_v43 = vld [vmem:[#allocation8 + $0x10] ss:$8 sps:$4 sm:$0xff]  }
  0x95   : > { %1687 = vmatprep.subr.bf16.mxu0 %v1899_v8  ;;  %v1947_v44 = vld [vmem:[#allocation8 + $0x24] ss:$8 sps:$4 sm:$0xff]   ;;  %v1945_v45 = vld [vmem:[#allocation8 + $0x20] ss:$8 sps:$4 sm:$0xff]   ;;  %v2568_v46 = vld [vmem:[#allocation8 + $0x34] ss:$8 sps:$4 sm:$0xff]   ;;  %p2207_p3 = pnand %p2206_p10, %p2481_p5  ;;  %p2214_p1 = por %p2213_p2, %p2212_p12 }
  0x96   : > { %1764 = vmatpush3.bf16.msra.mxu1 %v1933_v21  ;;  %v2570_v47 = vld [vmem:[#allocation8 + $0x30] ss:$8 sps:$4 sm:$0xff]   ;;  %v2573_v48 = vld [vmem:[#allocation8 + $0x44] ss:$8 sps:$4 sm:$0xff]   ;;  %v2576_v49 = vld [vmem:[#allocation8 + $0x40] ss:$8 sps:$4 sm:$0xff]  }
  0x97   : > { %1765 = vmatprep.subr.bf16.mxu1 %v1934_v35  ;;  %v2579_v50 = vld [vmem:[#allocation8 + $0x54] ss:$8 sps:$4 sm:$0xff]   ;;  %v2582_v51 = vld [vmem:[#allocation8 + $0x50] ss:$8 sps:$4 sm:$0xff]   ;;  %v2589_v54 = vld [vmem:[%s2736_s2] ss:$0 sm:$0xff]  ;;  %p2208_p7 = pneg %p2207_p3 }
  0x98   : > { %1688 = vmatpush3.bf16.msra.mxu0 %v1900_v9 }
  0x99   : > { %1689 = vmatprep.subr.bf16.mxu0 %v1901_v10  ;;  %p2215_p4 = pnand %p2214_p1, %p2208_p7 }
  0x9a   : > { %1766 = vmatpush3.bf16.msra.mxu1 %v1934_v35 }
  0x9b   : > { %1767 = vmatprep.subr.bf16.mxu1 %v1935_v36 }
  0x9c   : > { %1690 = vmatpush3.bf16.msra.mxu0 %v1902_v12 }
  0x9d   : > { %1691 = vmatprep.subr.bf16.mxu0 %v1903_v13 }
  0x9e   : > { %1768 = vmatpush3.bf16.msra.mxu1 %v1935_v36 }
  0x9f   : > { %1769 = vmatprep.subr.bf16.mxu1 %v1936_v37 }
  0xa0   : > { %1692 = vmatpush3.bf16.msra.mxu0 %v1904_v14 }
  0xa1   : > { %1693 = vmatprep.subr.bf16.mxu0 %v1905_v15 }
  0xa2   : > { %1770 = vmatpush3.bf16.msra.mxu1 %v1936_v37 }
  0xa3   : > { %1771 = vmatprep.subr.bf16.mxu1 %v1937_v38 }
  0xa4   : > { %1694 = vmatpush3.bf16.msra.mxu0 %v1906_v16 }
  0xa5   : > { %997 = vmatprep.subr.bf16.mxu0 %v1941_v41 }
  0xa6   : > { %1772 = vmatpush3.bf16.msra.mxu1 %v1937_v38 }
  0xa7   : > { %609 = vmatmul.mubr.bf16.vlgmr.msra.gmra.mrb[0].mxu0 %v1907_v18  ;;  %1773 = vmatprep.subr.bf16.mxu1 %v1938_v39 }
  0xa8   : > { %616 = vmatprep.mubr.bf16.mxu0 %v1910_v20  ;;  %998 = vmatpush1.bf16.msra.mxu0 %v1939_v40 }
  0xa9   : > { %999 = vmatprep.subr.bf16.mxu0 %v1944_v42 }
  0xaa   : > { %1774 = vmatpush3.bf16.msra.mxu1 %v1938_v39 }
  0xab   : > { %1791 = vmatprep.subr.bf16.mxu1 %v1941_v41 }
  0xac   : > { %1000 = vmatpush1.bf16.msra.mxu0 %v1942_v43 }
  0xad   : > { %1001 = vmatprep.subr.bf16.mxu0 %v1947_v44 }
  0xaf   : > { %617 = vmatmul.mubr.bf16.gmra.mrb[4].mxu0 %v1912_v22 }
  0xb0   : > { %624 = vmatprep.mubr.bf16.mxu0 %v1913_v23  ;;  %1002 = vmatpush1.bf16.msra.mxu0 %v1945_v45 }
  0xb1   : > { %1003 = vmatprep.subr.bf16.mxu0 %v2568_v46 }
  0xb4   : > { %1004 = vmatpush1.bf16.msra.mxu0 %v2570_v47 }
  0xb5   : > { %1005 = vmatprep.subr.bf16.mxu0 %v2573_v48 }
  0xb7   : > { %625 = vmatmul.mubr.bf16.gmra.mrb[8].mxu0 %v1915_v24 }
  0xb8   : > { %632 = vmatprep.mubr.bf16.mxu0 %v1916_v25  ;;  %1006 = vmatpush1.bf16.msra.mxu0 %v2576_v49 }
  0xb9   : > { %1007 = vmatprep.subr.bf16.mxu0 %v2579_v50 }
  0xbc   : > { %1008 = vmatpush1.bf16.msra.mxu0 %v2582_v51 }
  0xbf   : > { %633 = vmatmul.mubr.bf16.gmra.mrb[12].mxu0 %v1918_v26 }
  0xc0   : > { %640 = vmatprep.mubr.bf16.mxu0 %v1919_v27 }
  0xc7   : > { %641 = vmatmul.mubr.bf16.gmra.mrb[16].mxu0 %v1921_v28 }
  0xc8   : > { %648 = vmatprep.mubr.bf16.mxu0 %v1922_v29 }
  0xcf   : > { %649 = vmatmul.mubr.bf16.gmra.mrb[20].mxu0 %v1924_v30 }
  0xd0   : > { %656 = vmatprep.mubr.bf16.mxu0 %v1925_v31 }
  0xd7   : > { %657 = vmatmul.mubr.bf16.gmra.mrb[24].mxu0 %v1927_v32 }
  0xd8   : > { %664 = vmatprep.mubr.bf16.mxu0 %v1928_v33 }
  0xdf   : > { %665 = vmatmul.mubr.bf16.gmra.mrb[28].mxu0 %v1930_v34 }
 0x17a   : > { %v1695_v52 = vpop.f32.mrb[0].mxu0 }
 0x17b   : > { %v1696_v53 = vpop.f32.mrb[1].mxu0 }
 0x17c   : > { %v1697_v55 = vadd.f32 %v1696_v53, %v1695_v52  ;;  %v1698_v56 = vpop.f32.mrb[2].mxu0 }
 0x17d   : > { %v1699_v57 = vpop.f32.mrb[3].mxu0 }
 0x17e   : > { %v1700_v58 = vadd.f32 %v1699_v57, %v1698_v56  ;;  %v611_v59 = vadd.f32 %v1697_v55, %v2589_v54 }
 0x180   : > { %v614_v60 = vadd.f32 %v1700_v58, %v2589_v54  ;;  %v673_v62 = vmax.f32 %v611_v59, 0.0 }
 0x182   : > { %v1701_v61 = vpop.f32.mrb[4].mxu0  ;;  %v674_v63 = vmax.f32 %v614_v60, 0.0 }
 0x183   : > { %v1702_v0 = vpop.f32.mrb[5].mxu0 }
 0x184   : > { %v1703_v1 = vadd.f32 %v1702_v0, %v1701_v61  ;;  %v1704_v2 = vpop.f32.mrb[6].mxu0  ;;  %v689_v3 = vpack.c.bf16 %v674_v63, %v673_v62 }
 0x185   : > { %v1705_v4 = vpop.f32.mrb[7].mxu0 }
 0x186   : > { %v619_v5 = vadd.f32 %v1703_v1, %v2589_v54  ;;  %v1706_v6 = vadd.f32 %v1705_v4, %v1704_v2  ;;  %1775 = vmatprep.mubr.bf16.mxu1 %v689_v3 }
 0x188   : > { %v622_v7 = vadd.f32 %v1706_v6, %v2589_v54  ;;  %v675_v8 = vmax.f32 %v619_v5, 0.0 }
 0x18a   : > { %v676_v9 = vmax.f32 %v622_v7, 0.0  ;;  %v1707_v10 = vpop.f32.mrb[8].mxu0 }
 0x18b   : > { %v1708_v11 = vpop.f32.mrb[9].mxu0 }
 0x18c   : > { %v1709_v12 = vadd.f32 %v1708_v11, %v1707_v10  ;;  %v1710_v13 = vpop.f32.mrb[10].mxu0  ;;  %v690_v14 = vpack.c.bf16 %v676_v9, %v675_v8 }
 0x18d   : > { %v1711_v15 = vpop.f32.mrb[11].mxu0 }
 0x18e   : > { %v627_v16 = vadd.f32 %v1709_v12, %v2589_v54  ;;  %v1712_v17 = vadd.f32 %v1711_v15, %v1710_v13  ;;  %1776 = vmatmul.mubr.bf16.vlgmr.msra.gmra.mrb[0].mxu1 %v690_v14  ;;  %v1959_v14 = vld [vmem:[#allocation8 + $0x64] ss:$8 sps:$4 sm:$0xff]   ;;  %v1957_v15 = vld [vmem:[#allocation8 + $0x60] ss:$8 sps:$4 sm:$0xff]  }
 0x18f   : > { %1799 = vmatpush1.bf16.msra.mxu1 %v1939_v40  ;;  %1009 = vmatprep.subr.bf16.mxu0 %v1959_v14 }
 0x190   : > { %v630_v18 = vadd.f32 %v1712_v17, %v2589_v54  ;;  %1792 = vmatprep.subr.bf16.mxu1 %v1944_v42  ;;  %v677_v19 = vmax.f32 %v627_v16, 0.0  ;;  %1010 = vmatpush1.bf16.msra.mxu0 %v1957_v15  ;;  %v1962_v16 = vld [vmem:[#allocation8 + $0x74] ss:$8 sps:$4 sm:$0xff]   ;;  %v1960_v17 = vld [vmem:[#allocation8 + $0x70] ss:$8 sps:$4 sm:$0xff]  }
 0x191   : > { %1011 = vmatprep.subr.bf16.mxu0 %v1962_v16 }
 0x192   : > { %v678_v20 = vmax.f32 %v630_v18, 0.0  ;;  %v1713_v21 = vpop.f32.mrb[12].mxu0  ;;  %v2289_v18 = vmov 0  }
 0x193   : > { %v1714_v22 = vpop.f32.mrb[13].mxu0  ;;  %1800 = vmatpush1.bf16.msra.mxu1 %v1942_v43  ;;  %1029 = vmatprep.mubr.bf16.mxu0 %v2289_v18 }
 0x194   : > { %v1715_v23 = vadd.f32 %v1714_v22, %v1713_v21  ;;  %v1716_v24 = vpop.f32.mrb[14].mxu0  ;;  %v691_v25 = vpack.c.bf16 %v678_v20, %v677_v19  ;;  %1793 = vmatprep.subr.bf16.mxu1 %v1947_v44  ;;  %1012 = vmatpush1.bf16.msra.mxu0 %v1960_v17 }
 0x195   : > { %v1717_v26 = vpop.f32.mrb[15].mxu0 }
 0x196   : > { %v635_v27 = vadd.f32 %v1715_v23, %v2589_v54  ;;  %v1718_v28 = vadd.f32 %v1717_v26, %v1716_v24  ;;  %1779 = vmatprep.mubr.bf16.mxu1 %v691_v25 }
 0x197   : > { %1801 = vmatpush1.bf16.msra.mxu1 %v1945_v45 }
 0x198   : > { %v638_v29 = vadd.f32 %v1718_v28, %v2589_v54  ;;  %1794 = vmatprep.subr.bf16.mxu1 %v2568_v46  ;;  %v679_v30 = vmax.f32 %v635_v27, 0.0 }
 0x19a   : > { %v680_v31 = vmax.f32 %v638_v29, 0.0  ;;  %v1719_v32 = vpop.f32.mrb[16].mxu0 }
 0x19b   : > { %v1720_v33 = vpop.f32.mrb[17].mxu0  ;;  %1802 = vmatpush1.bf16.msra.mxu1 %v2570_v47 }
 0x19c   : > { %v1721_v34 = vadd.f32 %v1720_v33, %v1719_v32  ;;  %v1722_v35 = vpop.f32.mrb[18].mxu0  ;;  %v692_v36 = vpack.c.bf16 %v680_v31, %v679_v30  ;;  %1795 = vmatprep.subr.bf16.mxu1 %v2573_v48 }
 0x19d   : > { %v1723_v37 = vpop.f32.mrb[19].mxu0 }
 0x19e   : > { %v643_v38 = vadd.f32 %v1721_v34, %v2589_v54  ;;  %v1724_v39 = vadd.f32 %v1723_v37, %v1722_v35  ;;  %1780 = vmatmul.mubr.bf16.gmra.mrb[4].mxu1 %v692_v36 }
 0x19f   : > { %1803 = vmatpush1.bf16.msra.mxu1 %v2576_v49 }
 0x1a0   : > { %v646_v40 = vadd.f32 %v1724_v39, %v2589_v54  ;;  %1796 = vmatprep.subr.bf16.mxu1 %v2579_v50  ;;  %v681_v41 = vmax.f32 %v643_v38, 0.0 }
 0x1a2   : > { %v682_v42 = vmax.f32 %v646_v40, 0.0  ;;  %v1725_v43 = vpop.f32.mrb[20].mxu0 }
 0x1a3   : > { %v1726_v44 = vpop.f32.mrb[21].mxu0  ;;  %1804 = vmatpush1.bf16.msra.mxu1 %v2582_v51 }
 0x1a4   : > { %v1727_v45 = vadd.f32 %v1726_v44, %v1725_v43  ;;  %v1728_v46 = vpop.f32.mrb[22].mxu0  ;;  %v693_v47 = vpack.c.bf16 %v682_v42, %v681_v41  ;;  %1797 = vmatprep.subr.bf16.mxu1 %v1959_v14 }
 0x1a5   : > { %v1729_v48 = vpop.f32.mrb[23].mxu0 }
 0x1a6   : > { %v651_v52 = vadd.f32 %v1727_v45, %v2589_v54  ;;  %v1730_v53 = vadd.f32 %v1729_v48, %v1728_v46  ;;  %1783 = vmatprep.mubr.bf16.mxu1 %v693_v47 }
 0x1a7   : > { %1805 = vmatpush1.bf16.msra.mxu1 %v1957_v15  ;;  %v905_v15 = vld [vmem:[%s2740_s6] sm:$0x3] }
 0x1a8   : > { %v654_v49 = vadd.f32 %v1730_v53, %v2589_v54  ;;  %v683_v55 = vmax.f32 %v651_v52, 0.0  ;;  %1798 = vmatprep.subr.bf16.mxu1 %v1962_v16 }
 0x1aa   : > { %v684_v56 = vmax.f32 %v654_v49, 0.0  ;;  %v1731_v57 = vpop.f32.mrb[24].mxu0 }
 0x1ab   : > { %v1732_v50 = vpop.f32.mrb[25].mxu0  ;;  %1806 = vmatpush1.bf16.msra.mxu1 %v1960_v17 }
 0x1ac   : > { %v1733_v58 = vadd.f32 %v1732_v50, %v1731_v57  ;;  %v1734_v59 = vpop.f32.mrb[26].mxu0  ;;  %v694_v60 = vpack.c.bf16 %v684_v56, %v683_v55 }
 0x1ad   : > { %v1735_v61 = vpop.f32.mrb[27].mxu0 }
 0x1ae   : > { %v659_v51 = vadd.f32 %v1733_v58, %v2589_v54  ;;  %v1736_v62 = vadd.f32 %v1735_v61, %v1734_v59  ;;  %1784 = vmatmul.mubr.bf16.gmra.mrb[8].mxu1 %v694_v60 }
 0x1b0   : > { %v662_v63 = vadd.f32 %v1736_v62, %v2589_v54  ;;  %v685_v0 = vmax.f32 %v659_v51, 0.0 }
 0x1b2   : > { %v686_v1 = vmax.f32 %v662_v63, 0.0  ;;  %v1737_v2 = vpop.f32.mrb[28].mxu0 }
 0x1b3   : > { %v1738_v3 = vpop.f32.mrb[29].mxu0 }
 0x1b4   : > { %v1739_v4 = vadd.f32 %v1738_v3, %v1737_v2  ;;  %v1740_v5 = vpop.f32.mrb[30].mxu0  ;;  %v695_v6 = vpack.c.bf16 %v686_v1, %v685_v0 }
 0x1b5   : > { %v1741_v7 = vpop.f32.mrb[31].mxu0 }
 0x1b6   : > { %v667_v8 = vadd.f32 %v1739_v4, %v2589_v54  ;;  %v1742_v9 = vadd.f32 %v1741_v7, %v1740_v5  ;;  %1787 = vmatprep.mubr.bf16.mxu1 %v695_v6 }
 0x1b8   : > { %v670_v10 = vadd.f32 %v1742_v9, %v2589_v54  ;;  %v687_v11 = vmax.f32 %v667_v8, 0.0  ;;  %v1612_v54 = vld [vmem:[%s2738_s4] ss:$0 sm:$0xff] }
 0x1ba   : > { %v688_v12 = vmax.f32 %v670_v10, 0.0 }
 0x1bc   : > { %v696_v13 = vpack.c.bf16 %v688_v12, %v687_v11  ;;  %v907_v12 = vlaneseq }
 0x1be   : > { %1788 = vmatmul.mubr.bf16.gmra.mrb[12].mxu1 %v696_v13  ;;  %v908_v13 = vshrl.u32 %v907_v12, 7 }
 0x1bf   : > { %1049 = vmatprep.mubr.bf16.mxu1 %v2289_v18 }
 0x1c0   : > { %v909_v14 = vsub.s32 0, %v908_v13  ;;  %v913_v16 = vsub.s32 1, %v908_v13 }
 0x1c2   : > { %v2627_v17 = vrot.slane %v905_v15, %v909_v14 }
 0x261   : > { %v1777_v19 = vpop.f32.mrb[0].mxu1 }
 0x262   : > { %v811_v20 = vadd.f32 %v1777_v19, %v1612_v54  ;;  %v802_v21 = vpop.f32.mrb[1].mxu1 }
 0x263   : > { %v803_v22 = vadd.f32 %v1612_v54, %v802_v21  ;;  %v1778_v23 = vpop.f32.mrb[2].mxu1 }
 0x264   : > { %v814_v24 = vadd.f32 %v1778_v23, %v1612_v54  ;;  %v805_v25 = vpop.f32.mrb[3].mxu1  ;;  %v867_v27 = vmax.f32 %v811_v20, 0.0 }
 0x265   : > { %v806_v26 = vadd.f32 %v1612_v54, %v805_v25  ;;  %v865_v29 = vmax.f32 %v803_v22, 0.0 }
 0x266   : > { %v868_v28 = vmax.f32 %v814_v24, 0.0 }
 0x267   : > { %v866_v30 = vmax.f32 %v806_v26, 0.0 }
 0x268   : > { %v882_v31 = vpack.c.bf16 %v868_v28, %v867_v27 }
 0x269   : > { %v881_v32 = vpack.c.bf16 %v866_v30, %v865_v29 }
 0x26b   : > { %1030 = vmatmul.mubr.bf16.vlgmr.msra.gmra.mrb[32].mxu0 %v881_v32 }
 0x26c   : > { %1039 = vmatprep.mubr.bf16.mxu0 %v2289_v18 }
 0x271   : > { %v1781_v33 = vpop.f32.mrb[4].mxu1 }
 0x272   : > { %v827_v34 = vadd.f32 %v1781_v33, %v1612_v54  ;;  %v818_v35 = vpop.f32.mrb[5].mxu1 }
 0x273   : > { %v819_v36 = vadd.f32 %v1612_v54, %v818_v35  ;;  %v1782_v37 = vpop.f32.mrb[6].mxu1  ;;  %1040 = vmatmul.mubr.bf16.gmra.mrb[36].mxu0 %v882_v31 }
 0x274   : > { %v830_v38 = vadd.f32 %v1782_v37, %v1612_v54  ;;  %v821_v39 = vpop.f32.mrb[7].mxu1  ;;  %v871_v41 = vmax.f32 %v827_v34, 0.0 }
 0x275   : > { %v822_v40 = vadd.f32 %v1612_v54, %v821_v39  ;;  %v869_v43 = vmax.f32 %v819_v36, 0.0 }
 0x276   : > { %v872_v42 = vmax.f32 %v830_v38, 0.0 }
 0x277   : > { %v870_v44 = vmax.f32 %v822_v40, 0.0 }
 0x278   : > { %v884_v45 = vpack.c.bf16 %v872_v42, %v871_v41 }
 0x279   : > { %v883_v46 = vpack.c.bf16 %v870_v44, %v869_v43 }
 0x27b   : > { %1050 = vmatmul.mubr.bf16.vlgmr.msra.gmra.mrb[16].mxu1 %v883_v46 }
 0x27c   : > { %1059 = vmatprep.mubr.bf16.mxu1 %v2289_v18 }
 0x281   : > { %v1785_v47 = vpop.f32.mrb[8].mxu1 }
 0x282   : > { %v843_v48 = vadd.f32 %v1785_v47, %v1612_v54  ;;  %v834_v52 = vpop.f32.mrb[9].mxu1 }
 0x283   : > { %v835_v53 = vadd.f32 %v1612_v54, %v834_v52  ;;  %v1786_v49 = vpop.f32.mrb[10].mxu1  ;;  %1060 = vmatmul.mubr.bf16.gmra.mrb[20].mxu1 %v884_v45 }
 0x284   : > { %v846_v55 = vadd.f32 %v1786_v49, %v1612_v54  ;;  %v837_v56 = vpop.f32.mrb[11].mxu1  ;;  %1069 = vmatprep.mubr.bf16.mxu1 %v2289_v18  ;;  %v875_v50 = vmax.f32 %v843_v48, 0.0 }
 0x285   : > { %v838_v57 = vadd.f32 %v1612_v54, %v837_v56  ;;  %v873_v59 = vmax.f32 %v835_v53, 0.0 }
 0x286   : > { %v876_v58 = vmax.f32 %v846_v55, 0.0 }
 0x287   : > { %v874_v60 = vmax.f32 %v838_v57, 0.0 }
 0x288   : > { %v886_v61 = vpack.c.bf16 %v876_v58, %v875_v50 }
 0x289   : > { %v885_v51 = vpack.c.bf16 %v874_v60, %v873_v59 }
 0x28b   : > { %1070 = vmatmul.mubr.bf16.gmra.mrb[24].mxu1 %v885_v51 }
 0x28c   : > { %1079 = vmatprep.mubr.bf16.mxu1 %v2289_v18 }
 0x291   : > { %v1789_v62 = vpop.f32.mrb[12].mxu1 }
 0x292   : > { %v859_v63 = vadd.f32 %v1789_v62, %v1612_v54  ;;  %v850_v0 = vpop.f32.mrb[13].mxu1 }
 0x293   : > { %v851_v1 = vadd.f32 %v1612_v54, %v850_v0  ;;  %v1790_v2 = vpop.f32.mrb[14].mxu1  ;;  %1080 = vmatmul.mubr.bf16.gmra.mrb[28].mxu1 %v886_v61 }
 0x294   : > { %v862_v3 = vadd.f32 %v1790_v2, %v1612_v54  ;;  %v853_v4 = vpop.f32.mrb[15].mxu1  ;;  %1089 = vmatprep.mubr.bf16.mxu1 %v2289_v18  ;;  %v879_v6 = vmax.f32 %v859_v63, 0.0 }
 0x295   : > { %v854_v5 = vadd.f32 %v1612_v54, %v853_v4  ;;  %v877_v8 = vmax.f32 %v851_v1, 0.0  ;;  %v2629_v54 = vrot.slane %v905_v15, %v913_v16 }
 0x296   : > { %v880_v7 = vmax.f32 %v862_v3, 0.0 }
 0x297   : > { %v878_v9 = vmax.f32 %v854_v5, 0.0 }
 0x298   : > { %v888_v10 = vpack.c.bf16 %v880_v7, %v879_v6 }
 0x299   : > { %v887_v11 = vpack.c.bf16 %v878_v9, %v877_v8 }
 0x29b   : > { %1090 = vmatmul.mubr.bf16.gmra.mrb[32].mxu1 %v887_v11 }
 0x29c   : > { %1099 = vmatprep.mubr.bf16.mxu1 %v2289_v18 }
 0x2a3   : > { %1100 = vmatmul.mubr.bf16.gmra.mrb[36].mxu1 %v888_v10 }
 0x33e   : > { %v1031_v19 = vpop.f32.mrb[32].mxu0 }
 0x33f   : > { %v1032_v20 = vadd.f32 %v1031_v19, %v2627_v17  ;;  %v1033_v21 = vpop.f32.mrb[33].mxu0 }
 0x340   : > { %v1034_v22 = vadd.f32 %v1033_v21, %v2629_v54  ;;  %v1035_v18 = vpop.f32.mrb[34].mxu0 }
 0x341   : > { %v1110_v23 = vsub.f32 0.0, %v1032_v20  ;;  %v1036_v24 = vadd.f32 %v1035_v18, %v2627_v17  ;;  %v1037_v25 = vpop.f32.mrb[35].mxu0 }
 0x342   : > { %v1111_v26 = vsub.f32 0.0, %v1034_v22  ;;  %v1038_v27 = vadd.f32 %v1037_v25, %v2629_v54 }
 0x343   : > { %v1142_v28 = vmul.f32 1.442695, %v1110_v23  ;;  %v1112_v29 = vsub.f32 0.0, %v1036_v24 }
 0x344   : > { %v1144_v30 = vmul.f32 1.442695, %v1111_v26  ;;  %v1113_v31 = vsub.f32 0.0, %v1038_v27 }
 0x345   : > { %1963 = vpow2.f32 %v1142_v28  ;;  %v1146_v32 = vmul.f32 1.442695, %v1112_v29 }
 0x346   : > { %1965 = vpow2.f32 %v1144_v30  ;;  %v1148_v33 = vmul.f32 1.442695, %v1113_v31  ;;  %v1041_v34 = vpop.f32.mrb[36].mxu0 }
 0x347   : > { %1967 = vpow2.f32 %v1146_v32  ;;  %v1042_v35 = vadd.f32 %v1041_v34, %v2627_v17  ;;  %v1043_v36 = vpop.f32.mrb[37].mxu0 }
 0x348   : > { %1969 = vpow2.f32 %v1148_v33  ;;  %v1044_v37 = vadd.f32 %v1043_v36, %v2629_v54  ;;  %v1045_v38 = vpop.f32.mrb[38].mxu0 }
 0x349   : > { %v1114_v39 = vsub.f32 0.0, %v1042_v35  ;;  %v1046_v40 = vadd.f32 %v1045_v38, %v2627_v17  ;;  %v1047_v41 = vpop.f32.mrb[39].mxu0 }
 0x34a   : > { %v1115_v42 = vsub.f32 0.0, %v1044_v37  ;;  %v1048_v43 = vadd.f32 %v1047_v41, %v2629_v54 }
 0x34b   : > { %v1150_v44 = vmul.f32 1.442695, %v1114_v39  ;;  %v1116_v45 = vsub.f32 0.0, %v1046_v40 }
 0x34c   : > { %v1152_v46 = vmul.f32 1.442695, %v1115_v42  ;;  %v1117_v47 = vsub.f32 0.0, %v1048_v43 }
 0x34d   : > { %1971 = vpow2.f32 %v1150_v44  ;;  %v1154_v48 = vmul.f32 1.442695, %v1116_v45 }
 0x34e   : > { %1973 = vpow2.f32 %v1152_v46  ;;  %v1156_v52 = vmul.f32 1.442695, %v1117_v47  ;;  %v1051_v53 = vpop.f32.mrb[16].mxu1 }
 0x34f   : > { %v1964_v49 = vpop.eup %1963  ;;  %1975 = vpow2.f32 %v1154_v48  ;;  %v1052_v55 = vadd.f32 %v1051_v53, %v2627_v17  ;;  %v1053_v56 = vpop.f32.mrb[17].mxu1 }
 0x350   : > { %v1966_v57 = vpop.eup %1965  ;;  %v1206_v50 = vadd.f32 1.0, %v1964_v49  ;;  %1977 = vpow2.f32 %v1156_v52  ;;  %v1054_v58 = vadd.f32 %v1053_v56, %v2629_v54  ;;  %v1055_v59 = vpop.f32.mrb[18].mxu1 }
 0x351   : > { %v1968_v60 = vpop.eup %1967  ;;  %v1207_v61 = vadd.f32 1.0, %v1966_v57  ;;  %v1118_v51 = vsub.f32 0.0, %v1052_v55  ;;  %v1056_v62 = vadd.f32 %v1055_v59, %v2627_v17  ;;  %v1057_v63 = vpop.f32.mrb[19].mxu1 }
 0x352   : > { %v1970_v0 = vpop.eup %1969  ;;  %1979 = vrcp.f32 %v1206_v50  ;;  %v1208_v1 = vadd.f32 1.0, %v1968_v60  ;;  %v1119_v2 = vsub.f32 0.0, %v1054_v58  ;;  %v1058_v3 = vadd.f32 %v1057_v63, %v2629_v54 }
 0x353   : > { %1981 = vrcp.f32 %v1207_v61  ;;  %v1209_v4 = vadd.f32 1.0, %v1970_v0  ;;  %v1158_v5 = vmul.f32 1.442695, %v1118_v51  ;;  %v1120_v6 = vsub.f32 0.0, %v1056_v62 }
 0x354   : > { %1983 = vrcp.f32 %v1208_v1  ;;  %v1160_v7 = vmul.f32 1.442695, %v1119_v2  ;;  %v1121_v8 = vsub.f32 0.0, %v1058_v3 }
 0x355   : > { %1985 = vrcp.f32 %v1209_v4  ;;  %v1162_v9 = vmul.f32 1.442695, %v1120_v6 }
 0x356   : > { %1987 = vpow2.f32 %v1158_v5  ;;  %v1164_v10 = vmul.f32 1.442695, %v1121_v8  ;;  %v1061_v11 = vpop.f32.mrb[20].mxu1 }
 0x357   : > { %v1972_v12 = vpop.eup %1971  ;;  %1989 = vpow2.f32 %v1160_v7  ;;  %v1062_v13 = vadd.f32 %v1061_v11, %v2627_v17  ;;  %v1063_v14 = vpop.f32.mrb[21].mxu1 }
 0x358   : > { %v1974_v15 = vpop.eup %1973  ;;  %v1210_v16 = vadd.f32 1.0, %v1972_v12  ;;  %1991 = vpow2.f32 %v1162_v9  ;;  %v1064_v19 = vadd.f32 %v1063_v14, %v2629_v54  ;;  %v1065_v20 = vpop.f32.mrb[22].mxu1 }
 0x359   : > { %v1976_v21 = vpop.eup %1975  ;;  %v1211_v22 = vadd.f32 1.0, %v1974_v15  ;;  %1993 = vpow2.f32 %v1164_v10  ;;  %v1122_v18 = vsub.f32 0.0, %v1062_v13  ;;  %v1066_v23 = vadd.f32 %v1065_v20, %v2627_v17  ;;  %v1067_v24 = vpop.f32.mrb[23].mxu1 }
 0x35a   : > { %v1978_v25 = vpop.eup %1977  ;;  %1995 = vrcp.f32 %v1210_v16  ;;  %v1212_v26 = vadd.f32 1.0, %v1976_v21  ;;  %v1123_v27 = vsub.f32 0.0, %v1064_v19  ;;  %v1068_v28 = vadd.f32 %v1067_v24, %v2629_v54 }
 0x35b   : > { %1997 = vrcp.f32 %v1211_v22  ;;  %v1213_v29 = vadd.f32 1.0, %v1978_v25  ;;  %v1166_v30 = vmul.f32 1.442695, %v1122_v18  ;;  %v1124_v31 = vsub.f32 0.0, %v1066_v23 }
 0x35c   : > { %v1980_v32 = vpop.eup %1979  ;;  %1999 = vrcp.f32 %v1212_v26  ;;  %v1168_v33 = vmul.f32 1.442695, %v1123_v27  ;;  %v1125_v34 = vsub.f32 0.0, %v1068_v28 }
 0x35d   : > { %v1982_v35 = vpop.eup %1981  ;;  %v1270_v36 = vmax.f32 %v1980_v32, 0.0  ;;  %2001 = vrcp.f32 %v1213_v29  ;;  %v1170_v37 = vmul.f32 1.442695, %v1124_v31 }
 0x35e   : > { %v1984_v38 = vpop.eup %1983  ;;  %v1271_v39 = vmax.f32 %v1982_v35, 0.0  ;;  %2003 = vpow2.f32 %v1166_v30  ;;  %v1172_v40 = vmul.f32 1.442695, %v1125_v34  ;;  %v1071_v41 = vpop.f32.mrb[24].mxu1 }
 0x35f   : > { %v1986_v42 = vpop.eup %1985  ;;  %v1302_v43 = vmin.f32 %v1270_v36, 1.0  ;;  %v1272_v44 = vmax.f32 %v1984_v38, 0.0  ;;  %2005 = vpow2.f32 %v1168_v33  ;;  %v1072_v45 = vadd.f32 %v1071_v41, %v2627_v17  ;;  %v1073_v46 = vpop.f32.mrb[25].mxu1 }
 0x360   : > { %v1988_v47 = vpop.eup %1987  ;;  %v1303_v48 = vmin.f32 %v1271_v39, 1.0  ;;  %v1273_v52 = vmax.f32 %v1986_v42, 0.0  ;;  %2007 = vpow2.f32 %v1170_v37  ;;  %v1074_v53 = vadd.f32 %v1073_v46, %v2629_v54  ;;  %v1075_v49 = vpop.f32.mrb[26].mxu1 }
 0x361   : > { %v1990_v55 = vpop.eup %1989  ;;  %v1304_v56 = vmin.f32 %v1272_v44, 1.0  ;;  %v1214_v57 = vadd.f32 1.0, %v1988_v47  ;;  %2009 = vpow2.f32 %v1172_v40  ;;  %v1126_v50 = vsub.f32 0.0, %v1072_v45  ;;  %v1077_v58 = vpop.f32.mrb[27].mxu1 }
 0x362   : > { %v1992_v59 = vpop.eup %1991  ;;  %v1661_v60 = vpack.c.bf16 %v1303_v48, %v1302_v43  ;;  %v1305_v61 = vmin.f32 %v1273_v52, 1.0  ;;  %v1215_v51 = vadd.f32 1.0, %v1990_v55  ;;  %v1127_v62 = vsub.f32 0.0, %v1074_v53 }
 0x363   : > { %v1994_v63 = vpop.eup %1993  ;;  %2011 = vrcp.f32 %v1214_v57  ;;  %v1216_v0 = vadd.f32 1.0, %v1992_v59  ;;  %v1174_v1 = vmul.f32 1.442695, %v1126_v50  ;;  %v1076_v2 = vadd.f32 %v1075_v49, %v2627_v17 }
 0x364   : > { %v1996_v3 = vpop.eup %1995  ;;  %1430 = vst [vmem:[%s2652_s17] sm:$0xff] %v1661_v60  ;;  %v1662_v4 = vpack.c.bf16 %v1305_v61, %v1304_v56  ;;  %2013 = vrcp.f32 %v1215_v51  ;;  %v1217_v5 = vadd.f32 1.0, %v1994_v63  ;;  %v1176_v6 = vmul.f32 1.442695, %v1127_v62 }
 0x365   : > { %v1998_v7 = vpop.eup %1997  ;;  %v1274_v8 = vmax.f32 %v1996_v3, 0.0  ;;  %2015 = vrcp.f32 %v1216_v0  ;;  %v1128_v9 = vsub.f32 0.0, %v1076_v2  ;;  %v1078_v10 = vadd.f32 %v1077_v58, %v2629_v54 }
 0x366   : > { %v2000_v11 = vpop.eup %1999  ;;  %1431 = vst [vmem:[%s2652_s17 + $0x8] sm:$0xff] %v1662_v4  ;;  %v1275_v12 = vmax.f32 %v1998_v7, 0.0  ;;  %2017 = vrcp.f32 %v1217_v5  ;;  %v1081_v13 = vpop.f32.mrb[28].mxu1 }
 0x367   : > { %v2002_v14 = vpop.eup %2001  ;;  %v1306_v15 = vmin.f32 %v1274_v8, 1.0  ;;  %v1276_v16 = vmax.f32 %v2000_v11, 0.0  ;;  %2019 = vpow2.f32 %v1174_v1  ;;  %v1178_v19 = vmul.f32 1.442695, %v1128_v9  ;;  %v1083_v20 = vpop.f32.mrb[29].mxu1 }
 0x368   : > { %v2004_v21 = vpop.eup %2003  ;;  %v1307_v22 = vmin.f32 %v1275_v12, 1.0  ;;  %v1277_v18 = vmax.f32 %v2002_v14, 0.0  ;;  %2021 = vpow2.f32 %v1176_v6  ;;  %v1129_v23 = vsub.f32 0.0, %v1078_v10  ;;  %v1085_v24 = vpop.f32.mrb[30].mxu1 }
 0x369   : > { %v2006_v25 = vpop.eup %2005  ;;  %v1308_v26 = vmin.f32 %v1276_v16, 1.0  ;;  %v1218_v27 = vadd.f32 1.0, %v2004_v21  ;;  %2023 = vpow2.f32 %v1178_v19  ;;  %v1082_v28 = vadd.f32 %v1081_v13, %v2627_v17  ;;  %v1087_v29 = vpop.f32.mrb[31].mxu1 }
 0x36a   : > { %v2008_v30 = vpop.eup %2007  ;;  %v1663_v31 = vpack.c.bf16 %v1307_v22, %v1306_v15  ;;  %v1309_v32 = vmin.f32 %v1277_v18, 1.0  ;;  %v1219_v33 = vadd.f32 1.0, %v2006_v25  ;;  %v1180_v34 = vmul.f32 1.442695, %v1129_v23 }
 0x36b   : > { %v2010_v35 = vpop.eup %2009  ;;  %2025 = vrcp.f32 %v1218_v27  ;;  %v1220_v36 = vadd.f32 1.0, %v2008_v30  ;;  %v1130_v37 = vsub.f32 0.0, %v1082_v28  ;;  %v1084_v38 = vadd.f32 %v1083_v20, %v2629_v54 }
 0x36c   : > { %1432 = vst [vmem:[%s2652_s17 + $0x10] sm:$0xff] %v1663_v31  ;;  %v1664_v39 = vpack.c.bf16 %v1309_v32, %v1308_v26  ;;  %2027 = vrcp.f32 %v1219_v33  ;;  %v1221_v40 = vadd.f32 1.0, %v2010_v35  ;;  %v1086_v41 = vadd.f32 %v1085_v24, %v2627_v17 }
 0x36d   : > { %v2012_v42 = vpop.eup %2011  ;;  %2029 = vrcp.f32 %v1220_v36  ;;  %v1182_v43 = vmul.f32 1.442695, %v1130_v37  ;;  %v1131_v44 = vsub.f32 0.0, %v1084_v38  ;;  %v1088_v45 = vadd.f32 %v1087_v29, %v2629_v54 }
 0x36e   : > { %v2014_v46 = vpop.eup %2013  ;;  %1433 = vst [vmem:[%s2652_s17 + $0x18] sm:$0xff] %v1664_v39  ;;  %v1278_v47 = vmax.f32 %v2012_v42, 0.0  ;;  %2031 = vrcp.f32 %v1221_v40  ;;  %v1132_v48 = vsub.f32 0.0, %v1086_v41  ;;  %v1091_v52 = vpop.f32.mrb[32].mxu1 }
 0x36f   : > { %v2016_v53 = vpop.eup %2015  ;;  %v1279_v49 = vmax.f32 %v2014_v46, 0.0  ;;  %2033 = vpow2.f32 %v1180_v34  ;;  %v1184_v55 = vmul.f32 1.442695, %v1131_v44  ;;  %v1133_v56 = vsub.f32 0.0, %v1088_v45  ;;  %v1093_v57 = vpop.f32.mrb[33].mxu1 }
 0x370   : > { %v2018_v50 = vpop.eup %2017  ;;  %v1310_v58 = vmin.f32 %v1278_v47, 1.0  ;;  %v1280_v59 = vmax.f32 %v2016_v53, 0.0  ;;  %2035 = vpow2.f32 %v1182_v43  ;;  %v1186_v60 = vmul.f32 1.442695, %v1132_v48  ;;  %v1095_v61 = vpop.f32.mrb[34].mxu1 }
 0x371   : > { %v2020_v51 = vpop.eup %2019  ;;  %v1311_v62 = vmin.f32 %v1279_v49, 1.0  ;;  %v1281_v63 = vmax.f32 %v2018_v50, 0.0  ;;  %2037 = vpow2.f32 %v1184_v55  ;;  %v1188_v0 = vmul.f32 1.442695, %v1133_v56  ;;  %v1097_v1 = vpop.f32.mrb[35].mxu1 }
 0x372   : > { %v2022_v2 = vpop.eup %2021  ;;  %v1312_v3 = vmin.f32 %v1280_v59, 1.0  ;;  %v1222_v4 = vadd.f32 1.0, %v2020_v51  ;;  %2039 = vpow2.f32 %v1186_v60  ;;  %v1092_v5 = vadd.f32 %v1091_v52, %v2627_v17 }
 0x373   : > { %v2024_v6 = vpop.eup %2023  ;;  %v1665_v7 = vpack.c.bf16 %v1311_v62, %v1310_v58  ;;  %v1313_v8 = vmin.f32 %v1281_v63, 1.0  ;;  %v1223_v9 = vadd.f32 1.0, %v2022_v2  ;;  %2041 = vpow2.f32 %v1188_v0 }
 0x374   : > { %2043 = vrcp.f32 %v1222_v4  ;;  %v1224_v10 = vadd.f32 1.0, %v2024_v6  ;;  %v1134_v11 = vsub.f32 0.0, %v1092_v5  ;;  %v1094_v12 = vadd.f32 %v1093_v57, %v2629_v54 }
 0x375   : > { %v2026_v13 = vpop.eup %2025  ;;  %1434 = vst [vmem:[%s2652_s17 + $0x20] sm:$0xff] %v1665_v7  ;;  %v1666_v14 = vpack.c.bf16 %v1313_v8, %v1312_v3  ;;  %2045 = vrcp.f32 %v1223_v9  ;;  %v1096_v15 = vadd.f32 %v1095_v61, %v2627_v17  ;;  %v1098_v16 = vadd.f32 %v1097_v1, %v2629_v54 }
 0x376   : > { %v2028_v19 = vpop.eup %2027  ;;  %v1282_v20 = vmax.f32 %v2026_v13, 0.0  ;;  %2047 = vrcp.f32 %v1224_v10  ;;  %v1190_v21 = vmul.f32 1.442695, %v1134_v11  ;;  %v1135_v22 = vsub.f32 0.0, %v1094_v12  ;;  %v1101_v18 = vpop.f32.mrb[36].mxu1 }
 0x377   : > { %v2030_v23 = vpop.eup %2029  ;;  %1435 = vst [vmem:[%s2652_s17 + $0x28] sm:$0xff] %v1666_v14  ;;  %v1283_v24 = vmax.f32 %v2028_v19, 0.0  ;;  %v1136_v25 = vsub.f32 0.0, %v1096_v15  ;;  %v1137_v26 = vsub.f32 0.0, %v1098_v16  ;;  %v1102_v27 = vadd.f32 %v1101_v18, %v2627_v17  ;;  %v1103_v28 = vpop.f32.mrb[37].mxu1 }
 0x378   : > { %v2032_v29 = vpop.eup %2031  ;;  %v1314_v30 = vmin.f32 %v1282_v20, 1.0  ;;  %v1284_v31 = vmax.f32 %v2030_v23, 0.0  ;;  %2049 = vpow2.f32 %v1190_v21  ;;  %v1192_v32 = vmul.f32 1.442695, %v1135_v22  ;;  %v1105_v33 = vpop.f32.mrb[38].mxu1 }
 0x379   : > { %v2034_v34 = vpop.eup %2033  ;;  %v1315_v35 = vmin.f32 %v1283_v24, 1.0  ;;  %v1285_v36 = vmax.f32 %v2032_v29, 0.0  ;;  %v1194_v37 = vmul.f32 1.442695, %v1136_v25  ;;  %v1196_v38 = vmul.f32 1.442695, %v1137_v26 }
 0x37a   : > { %v2036_v39 = vpop.eup %2035  ;;  %v1316_v40 = vmin.f32 %v1284_v31, 1.0  ;;  %v1225_v41 = vadd.f32 1.0, %v2034_v34  ;;  %2051 = vpow2.f32 %v1192_v32  ;;  %v1138_v42 = vsub.f32 0.0, %v1102_v27  ;;  %v1107_v43 = vpop.f32.mrb[39].mxu1 }
 0x37b   : > { %v2038_v44 = vpop.eup %2037  ;;  %v1667_v45 = vpack.c.bf16 %v1315_v35, %v1314_v30  ;;  %v1317_v46 = vmin.f32 %v1285_v36, 1.0  ;;  %v1226_v47 = vadd.f32 1.0, %v2036_v39  ;;  %2053 = vpow2.f32 %v1194_v37 }
 0x37c   : > { %v2040_v48 = vpop.eup %2039  ;;  %2055 = vrcp.f32 %v1225_v41  ;;  %v1227_v52 = vadd.f32 1.0, %v2038_v44  ;;  %v1198_v53 = vmul.f32 1.442695, %v1138_v42  ;;  %v1104_v49 = vadd.f32 %v1103_v28, %v2629_v54 }
 0x37d   : > { %v2042_v55 = vpop.eup %2041  ;;  %1436 = vst [vmem:[%s2652_s17 + $0x30] sm:$0xff] %v1667_v45  ;;  %v1668_v56 = vpack.c.bf16 %v1317_v46, %v1316_v40  ;;  %2057 = vrcp.f32 %v1226_v47  ;;  %v1228_v57 = vadd.f32 1.0, %v2040_v48  ;;  %v1106_v50 = vadd.f32 %v1105_v33, %v2627_v17 }
 0x37e   : > { %v2044_v58 = vpop.eup %2043  ;;  %2059 = vrcp.f32 %v1227_v52  ;;  %v1229_v59 = vadd.f32 1.0, %v2042_v55  ;;  %v1139_v60 = vsub.f32 0.0, %v1104_v49  ;;  %v1108_v61 = vadd.f32 %v1107_v43, %v2629_v54 }
 0x37f   : > { %v2046_v51 = vpop.eup %2045  ;;  %1437 = vst [vmem:[%s2652_s17 + $0x38] sm:$0xff] %v1668_v56  ;;  %v1286_v62 = vmax.f32 %v2044_v58, 0.0  ;;  %2061 = vrcp.f32 %v1228_v57  ;;  %v1140_v63 = vsub.f32 0.0, %v1106_v50 }
 0x380   : > { %v2048_v0 = vpop.eup %2047  ;;  %v1287_v1 = vmax.f32 %v2046_v51, 0.0  ;;  %2063 = vrcp.f32 %v1229_v59  ;;  %v1200_v2 = vmul.f32 1.442695, %v1139_v60  ;;  %v1141_v3 = vsub.f32 0.0, %v1108_v61 }
 0x381   : > { %v1318_v4 = vmin.f32 %v1286_v62, 1.0  ;;  %2065 = vpow2.f32 %v1196_v38  ;;  %v1202_v17 = vmul.f32 1.442695, %v1140_v63  ;;  %v1288_v8 = vmax.f32 %v2048_v0, 0.0 }
 0x382   : > { %v2050_v5 = vpop.eup %2049  ;;  %v1319_v6 = vmin.f32 %v1287_v1, 1.0  ;;  %2067 = vpow2.f32 %v1198_v53  ;;  %v1204_v7 = vmul.f32 1.442695, %v1141_v3 }
 0x383   : > { %v1230_v54 = vadd.f32 1.0, %v2050_v5  ;;  %2069 = vpow2.f32 %v1200_v2  ;;  %v1320_v16 = vmin.f32 %v1288_v8, 1.0 }
 0x384   : > { %v2052_v9 = vpop.eup %2051  ;;  %v1669_v10 = vpack.c.bf16 %v1319_v6, %v1318_v4  ;;  %2071 = vpow2.f32 %v1202_v17 }
 0x385   : > { %v2054_v11 = vpop.eup %2053  ;;  %2073 = vrcp.f32 %v1230_v54  ;;  %v1231_v12 = vadd.f32 1.0, %v2052_v9 }
 0x386   : > { %v2056_v13 = vpop.eup %2055  ;;  %1438 = vst [vmem:[%s2652_s17 + $0x40] sm:$0xff] %v1669_v10  ;;  %v1232_v14 = vadd.f32 1.0, %v2054_v11  ;;  %2075 = vpow2.f32 %v1204_v7 }
 0x387   : > { %v2058_v15 = vpop.eup %2057  ;;  %v1289_v19 = vmax.f32 %v2056_v13, 0.0  ;;  %2077 = vrcp.f32 %v1231_v12 }
 0x388   : > { %v2060_v20 = vpop.eup %2059  ;;  %v1290_v21 = vmax.f32 %v2058_v15, 0.0  ;;  %2079 = vrcp.f32 %v1232_v14 }
 0x389   : > { %v2062_v22 = vpop.eup %2061  ;;  %v1321_v18 = vmin.f32 %v1289_v19, 1.0  ;;  %v1291_v23 = vmax.f32 %v2060_v20, 0.0 }
 0x38a   : > { %v2064_v24 = vpop.eup %2063  ;;  %v1322_v25 = vmin.f32 %v1290_v21, 1.0  ;;  %v1292_v26 = vmax.f32 %v2062_v22, 0.0 }
 0x38b   : > { %v2066_v27 = vpop.eup %2065  ;;  %v1670_v28 = vpack.c.bf16 %v1321_v18, %v1320_v16  ;;  %v1323_v29 = vmin.f32 %v1291_v23, 1.0  ;;  %v1293_v30 = vmax.f32 %v2064_v24, 0.0 }
 0x38c   : > { %v2068_v31 = vpop.eup %2067  ;;  %v1324_v32 = vmin.f32 %v1292_v26, 1.0  ;;  %v1233_v33 = vadd.f32 1.0, %v2066_v27 }
 0x38d   : > { %v2070_v34 = vpop.eup %2069  ;;  %1439 = vst [vmem:[%s2652_s17 + $0x48] sm:$0xff] %v1670_v28  ;;  %v1671_v35 = vpack.c.bf16 %v1323_v29, %v1322_v25  ;;  %v1325_v36 = vmin.f32 %v1293_v30, 1.0  ;;  %v1234_v37 = vadd.f32 1.0, %v2068_v31 }
 0x38e   : > { %v2072_v38 = vpop.eup %2071  ;;  %2081 = vrcp.f32 %v1233_v33  ;;  %v1235_v39 = vadd.f32 1.0, %v2070_v34 }
 0x38f   : > { %v2074_v40 = vpop.eup %2073  ;;  %1440 = vst [vmem:[%s2652_s17 + $0x50] sm:$0xff] %v1671_v35  ;;  %v1672_v41 = vpack.c.bf16 %v1325_v36, %v1324_v32  ;;  %2083 = vrcp.f32 %v1234_v37  ;;  %v1236_v42 = vadd.f32 1.0, %v2072_v38 }
 0x390   : > { %v2076_v43 = vpop.eup %2075  ;;  %v1294_v44 = vmax.f32 %v2074_v40, 0.0  ;;  %2085 = vrcp.f32 %v1235_v39 }
 0x391   : > { %v2078_v45 = vpop.eup %2077  ;;  %1441 = vst [vmem:[%s2652_s17 + $0x58] sm:$0xff] %v1672_v41  ;;  %2087 = vrcp.f32 %v1236_v42  ;;  %v1237_v46 = vadd.f32 1.0, %v2076_v43 }
 0x392   : > { %v2080_v47 = vpop.eup %2079  ;;  %v1326_v48 = vmin.f32 %v1294_v44, 1.0  ;;  %v1295_v52 = vmax.f32 %v2078_v45, 0.0 }
 0x393   : > { %2089 = vrcp.f32 %v1237_v46  ;;  %v1296_v49 = vmax.f32 %v2080_v47, 0.0 }
 0x394   : > { %v1327_v53 = vmin.f32 %v1295_v52, 1.0 }
 0x395   : > { %v1328_v50 = vmin.f32 %v1296_v49, 1.0 }
 0x396   : > { %v1673_v55 = vpack.c.bf16 %v1327_v53, %v1326_v48 }
 0x398   : > { %v2082_v56 = vpop.eup %2081  ;;  %1442 = vst [vmem:[%s2652_s17 + $0x60] sm:$0xff] %v1673_v55 }
 0x399   : > { %v2084_v57 = vpop.eup %2083  ;;  %v1297_v58 = vmax.f32 %v2082_v56, 0.0 }
 0x39a   : > { %v2086_v59 = vpop.eup %2085  ;;  %v1298_v60 = vmax.f32 %v2084_v57, 0.0 }
 0x39b   : > { %v2088_v61 = vpop.eup %2087  ;;  %v1329_v51 = vmin.f32 %v1297_v58, 1.0  ;;  %v1299_v62 = vmax.f32 %v2086_v59, 0.0 }
 0x39c   : > { %v1330_v63 = vmin.f32 %v1298_v60, 1.0  ;;  %v1300_v0 = vmax.f32 %v2088_v61, 0.0 }
 0x39d   : > { %v2090_v1 = vpop.eup %2089  ;;  %v1674_v2 = vpack.c.bf16 %v1329_v51, %v1328_v50  ;;  %v1331_v3 = vmin.f32 %v1299_v62, 1.0 }
 0x39e   : > { %v1332_v4 = vmin.f32 %v1300_v0, 1.0  ;;  %v1301_v17 = vmax.f32 %v2090_v1, 0.0 }
 0x39f   : > { %1443 = vst [vmem:[%s2652_s17 + $0x68] sm:$0xff] %v1674_v2  ;;  %v1675_v5 = vpack.c.bf16 %v1331_v3, %v1330_v63 }
 0x3a0   : > { %v1333_v6 = vmin.f32 %v1301_v17, 1.0 }
 0x3a1   : > { %1444 = vst [vmem:[%s2652_s17 + $0x70] sm:$0xff] %v1675_v5 }
 0x3a2   : > { %v1676_v7 = vpack.c.bf16 %v1333_v6, %v1332_v4 }
 0x3a4   : > { %1445 = vst [vmem:[%s2652_s17 + $0x78] sm:$0xff] %v1676_v7 }
 0x3a5   : > { %2218 = shalt.err (!%p2215_p4)
}
 0x3a6   : > { %s2219_s14 = scalar_lea.hbm %s2687_s23, 2048  ;;  %s2223_s13 = scalar_lea.hbm %s2741_s7, 4096 }
 0x3a7   : > { %p2220_p9 = scmp.ne.s32.totalorder %s2687_s23, %s2219_s14  ;;  %p2224_p8 = scmp.lt.u32.totalorder %s2687_s23, %s2741_s7 }
 0x3a8   : > { %p2225_p13 = scmp.lt.u32.totalorder %s2223_s13, %s2219_s14  ;;  %p2227_p10 = scmp.lt.u32.totalorder %s2219_s14, %s2687_s23 }
 0x3a9   : > { %p2221_p0 = pnand %p2220_p9, %p2481_p5 }
 0x3aa   : > { %p2226_p6 = por %p2225_p13, %p2224_p8 }
 0x3ab   : > { %p2222_p11 = pneg %p2221_p0 }
 0x3ac   : > { %p2228_p3 = por %p2227_p10, %p2226_p6 }
 0x3ae   : > { %p2229_p7 = pnand %p2228_p3, %p2222_p11 }
 0x3b0   : > { %2232 = shalt.err (!%p2229_p7)
}
 0x3b1   : > { %s2291_s16 = smov 128   ;;  %s2292_s29 = smov 8  }
 0x3b2   : > { %1821 = dma.vmem_to_hbm [thread:$0]  (%p2481_p5), %s2689_s21, 2048, %s2687_s23, %s1447_s11, %s2291_s16, %s2291_s16, %s2292_s29  }
 0x3b3 PF: > { %s2761_s15 = sld [smem:[#allocation15_spill]]  ;;  %s1476_s28 = sand.u32 1, %s2267_s24  }
 0x3b4   : > { %p2763_p2 = scmp.ge.s32.totalorder %s2279_s27, 2  ;;  %s1477_s30 = scalar_lea.sflag [#allocation4], %s1476_s28 }
 0x3b9   : > { %p2762_p12 = scmp.ne.s32.totalorder %s2761_s15, 0 }
 0x3bb   : > { %p1838_p1 = pnand %p2763_p2, %p2762_p12 }
 0x3bd   : > { %2262 = dma.done.wait (!%p1838_p1), %s1477_s30, 2048  }
 0x3be   : > { %2264 = vsyncadd (!%p1838_p1), %s1477_s30, 4294965248  ;;  %p22_p4 = scmp.ge.s32.totalorder %s2467_s8, 4   ;;  %s2764_s24 = smov %s2271_s25 }
 0x3bf   : > { %s2765_s25 = smov %s2275_s26  ;;  %s2766_s26 = smov %s2477_s19 }
 0x3c0   : > { %s2767_s27 = smov %s2467_s8  ;;  %24 = sbr.rel (!%p22_p4) target bundleno = 7 (0x7), region = 105 }
 0x3c7   :  { %1482 = vsyncpa [#allocation3], 1 }
 0x3c8   :  { %1484 = vsyncpa [#allocation3 + $0x1], 1 }
 0x3c9   :  { %1485 = vsyncpa [#allocation6], 1 }
 0x3ca   :  { %1486 = vsyncpa [#allocation9], 1 }
 0x3cb   :  { %1487 = vsyncpa [#allocation4], 1 }
 0x3cc   :  { %1489 = vsyncpa [#allocation4 + $0x1], 1 }

</bundles_post_ra>
